<compile_context>
chip_gen: v6e
topology: v6e:2x2x1
jax: 0.10.0
libtpu: 0.0.40
codegen_flags: <defaults>
</compile_context>

<pallas_src>
import jax
import jax.numpy as jnp
from jax import lax
from jax.experimental import pallas as pl
from jax.experimental.pallas import tpu as pltpu


def gdn_kernel(x1_ref, x2_ref, w_ref, c_ref, out_ref):
    # x1_ref / x2_ref: (D, blk) feature-major tiles (lane dim = node index).
    # w_ref: (D, 2) resident folded weights [va | vb].  c_ref: (1, 1) SMEM.
    eps2 = 1e-24                       # (F.normalize default eps = 1e-12)^2
    x1 = x1_ref[...]
    x2 = x2_ref[...]
    w = w_ref[...]
    va = w[:, 0:1]                     # (D, 1) — broadcast across lanes
    vb = w[:, 1:2]

    # Per-node sums over the D sublanes -> lane-dense (1, blk) rows.
    # Pure VPU multiplies + sublane (XLU) reductions: exact f32, no MXU,
    # no materialized normalized copies.
    ss1 = jnp.sum(x1 * x1, axis=0, keepdims=True)
    ss2 = jnp.sum(x2 * x2, axis=0, keepdims=True)
    d1 = jnp.sum(va * x1, axis=0, keepdims=True)
    d2 = jnp.sum(vb * x2, axis=0, keepdims=True)

    # y = (va.x1)/max(||x1||,eps) + (vb.x2)/max(||x2||,eps) + c ; rsqrt -> EUP.
    s = (d1 * lax.rsqrt(jnp.maximum(ss1, eps2))
         + d2 * lax.rsqrt(jnp.maximum(ss2, eps2))
         + c_ref[0, 0])
    out_ref[...] = s.astype(out_ref.dtype)


def gdn_forward(x1, x2, w0, b0, w1, b1, *, block_n=16384):
    """x1, x2: (N, D) float32.  w0: (D, 2D), b0: (D,), w1: (1, D), b1: (1,).

    Returns the module's (N, 1) anomaly score.
    """
    N, D = x1.shape
    hi = lax.Precision.HIGHEST

    # ---- offline weight folding (plain JAX glue, tiny, runs once) ----
    v = jnp.dot(w1, w0, precision=hi).reshape(2 * D).astype(jnp.float32)   # (2D,)
    w_stack = jnp.stack([v[:D], v[D:]], axis=1)                            # (D, 2)
    c = (jnp.dot(w1, b0.reshape(D, 1), precision=hi)
         + b1.reshape(1, 1)).astype(jnp.float32)                           # (1, 1)

    # ---- feature-major layout: node axis on lanes -> dense 128-lane DMA ----
    # TODO(synk): producers should emit x1/x2 as (D, N) directly so this
    #             transpose copy disappears from the end-to-end graph.
    x1t = x1.astype(jnp.float32).T                                          # (D, N)
    x2t = x2.astype(jnp.float32).T

    # ---- adaptive tiling: no jnp.pad; ragged last tile is masked by Pallas ----
    if N <= 256:
        blk = N                                   # single tile == full array dims
    else:
        n_tiles = max(pl.cdiv(N, block_n), 2)     # >=2 tiles: pipeline + megacore
        blk = 128 * pl.cdiv(pl.cdiv(N, n_tiles), 128)
    grid = (pl.cdiv(N, blk),)

    # VMEM budget: 2 inputs x 2 pipeline buffers x (D_pad, blk) + output rows.
    d_pad = ((D + 7) // 8) * 8
    vmem_bytes = (4 * d_pad * blk + 2 * 8 * blk + d_pad * 256) * 4
    vmem_limit = min(max(2 * vmem_bytes, 16 * 1024 * 1024), 48 * 1024 * 1024)

    out = pl.pallas_call(
        gdn_kernel,
        out_shape=jax.ShapeDtypeStruct((1, N), jnp.float32),
        grid=grid,
        in_specs=[
            pl.BlockSpec((D, blk), lambda i: (0, i)),            # x1.T tiles
            pl.BlockSpec((D, blk), lambda i: (0, i)),            # x2.T tiles
            pl.BlockSpec((D, 2), lambda i: (0, 0)),              # [va|vb] resident
            pl.BlockSpec(memory_space=pltpu.MemorySpace.SMEM),   # c scalar
        ],
        out_specs=pl.BlockSpec((1, blk), lambda i: (0, i)),      # lane-dense row
        compiler_params=pltpu.CompilerParams(
            dimension_semantics=("parallel",),   # shard row loop across TCs (v7x)
            vmem_limit_bytes=vmem_limit,
        ),
        cost_estimate=pl.CostEstimate(
            flops=8 * N * D,
            transcendentals=2 * N,
            bytes_accessed=(2 * N * D + N + 2 * D + 1) * 4,      # dense traffic
        ),
    )(x1t, x2t, w_stack, c)

    # Back to the module's (N, 1) output shape (free reshape of the (1, N) row).
    return out.reshape(N, 1)


def reference_forward(x1, x2, w0, b0, w1, b1):
    eps = 1e-12
    n1 = x1 / jnp.maximum(jnp.linalg.norm(x1, axis=1, keepdims=True), eps)
    n2 = x2 / jnp.maximum(jnp.linalg.norm(x2, axis=1, keepdims=True), eps)
    cat = jnp.concatenate([n1, n2], axis=1)
    h = cat @ w0.T + b0
    return h @ w1.T + b1


if __name__ == "__main__":
    D = 32  # args.hidden_dim
    key = jax.random.PRNGKey(0)
    k_x1, k_x2, k_w0, k_w1, k_xa, k_xb = jax.random.split(key, 6)

    # AnomalyLayer init: W0 [D,2D], W1 [1,D] kaiming_normal_, biases zero.
    w0 = jax.random.normal(k_w0, (D, 2 * D), dtype=jnp.float32) * jnp.sqrt(2.0 / (2 * D))
    b0 = jnp.zeros((D,), dtype=jnp.float32)
    w1 = jax.random.normal(k_w1, (1, D), dtype=jnp.float32) * jnp.sqrt(2.0 / D)
    b1 = jnp.zeros((1,), dtype=jnp.float32)

    # Test 1: module-scale demo (batch of 8 nodes) — single-tile path.
    N1 = 8
    x1 = jax.random.normal(k_x1, (N1, D), dtype=jnp.float32)
    x2 = jax.random.normal(k_x2, (N1, D), dtype=jnp.float32)
    out1 = jax.block_until_ready(gdn_forward(x1, x2, w0, b0, w1, b1))
    ref1 = reference_forward(x1, x2, w0, b0, w1, b1)
    assert out1.shape == (N1, 1), out1.shape
    assert jnp.allclose(out1, ref1, atol=1e-4, rtol=1e-4), \
        float(jnp.max(jnp.abs(out1 - ref1)))

    # Test 2: multi-tile grid with a ragged last tile (no padding copy).
    N2 = 5000
    xa = jax.random.normal(k_xa, (N2, D), dtype=jnp.float32)
    xb = jax.random.normal(k_xb, (N2, D), dtype=jnp.float32)
    out2 = jax.block_until_ready(gdn_forward(xa, xb, w0, b0, w1, b1))
    ref2 = reference_forward(xa, xb, w0, b0, w1, b1)
    assert out2.shape == (N2, 1), out2.shape
    assert jnp.allclose(out2, ref2, atol=1e-4, rtol=1e-4), \
        float(jnp.max(jnp.abs(out2 - ref2)))

    print("KERNEL_OK")
</pallas_src>

<mosaic_0001>
module attributes {stable_mosaic.version = 11 : i64} {
  func.func @gdn_kernel(%arg0: i32, %arg1: memref<32x8xf32, #tpu.memory_space<vmem>>, %arg2: memref<32x8xf32, #tpu.memory_space<vmem>>, %arg3: memref<32x2xf32, #tpu.memory_space<vmem>>, %arg4: memref<1x1xf32, #tpu.memory_space<smem>>, %arg5: memref<1x8xf32, #tpu.memory_space<vmem>>) attributes {dimension_semantics = [#tpu.dimension_semantics<parallel>], iteration_bounds = array<i64: 1>, scalar_prefetch = 0 : i64, scratch_operands = 0 : i64, tpu.core_type = #tpu.core_type<tc>, window_params = [{transform_indices = @transform_0, window_bounds = array<i64: 32, 8>}, {transform_indices = @transform_1, window_bounds = array<i64: 32, 8>}, {pipeline_mode = #tpu.pipeline_mode<synchronous>, transform_indices = @transform_2, window_bounds = array<i64: 32, 2>}, {transform_indices = @transform_3, window_bounds = array<i64: 1, 1>}, {transform_indices = @transform_4, window_bounds = array<i64: 1, 8>}]} {
    %c0 = arith.constant 0 : index
    %c0_0 = arith.constant 0 : index
    %0 = vector.load %arg1[%c0, %c0_0] : memref<32x8xf32, #tpu.memory_space<vmem>>, vector<32x8xf32>
    %c0_1 = arith.constant 0 : index
    %c0_2 = arith.constant 0 : index
    %1 = vector.load %arg2[%c0_1, %c0_2] : memref<32x8xf32, #tpu.memory_space<vmem>>, vector<32x8xf32>
    %c0_3 = arith.constant 0 : index
    %c0_4 = arith.constant 0 : index
    %2 = vector.load %arg3[%c0_3, %c0_4] : memref<32x2xf32, #tpu.memory_space<vmem>>, vector<32x2xf32>
    %3 = vector.extract_strided_slice %2 {offsets = [0, 0], sizes = [32, 1], strides = [1, 1]} : vector<32x2xf32> to vector<32x1xf32>
    %4 = vector.extract_strided_slice %2 {offsets = [0, 1], sizes = [32, 1], strides = [1, 1]} : vector<32x2xf32> to vector<32x1xf32>
    %5 = arith.mulf %0, %0 : vector<32x8xf32>
    %cst = arith.constant dense<0.000000e+00> : vector<8xf32>
    %6 = vector.multi_reduction <add>, %5, %cst [0] : vector<32x8xf32> to vector<8xf32>
    %7 = vector.shape_cast %6 : vector<8xf32> to vector<1x8xf32>
    %8 = arith.mulf %1, %1 : vector<32x8xf32>
    %cst_5 = arith.constant dense<0.000000e+00> : vector<8xf32>
    %9 = vector.multi_reduction <add>, %8, %cst_5 [0] : vector<32x8xf32> to vector<8xf32>
    %10 = vector.shape_cast %9 : vector<8xf32> to vector<1x8xf32>
    %11 = vector.broadcast %3 : vector<32x1xf32> to vector<32x8xf32>
    %12 = arith.mulf %11, %0 : vector<32x8xf32>
    %cst_6 = arith.constant dense<0.000000e+00> : vector<8xf32>
    %13 = vector.multi_reduction <add>, %12, %cst_6 [0] : vector<32x8xf32> to vector<8xf32>
    %14 = vector.shape_cast %13 : vector<8xf32> to vector<1x8xf32>
    %15 = vector.broadcast %4 : vector<32x1xf32> to vector<32x8xf32>
    %16 = arith.mulf %15, %1 : vector<32x8xf32>
    %cst_7 = arith.constant dense<0.000000e+00> : vector<8xf32>
    %17 = vector.multi_reduction <add>, %16, %cst_7 [0] : vector<32x8xf32> to vector<8xf32>
    %18 = vector.shape_cast %17 : vector<8xf32> to vector<1x8xf32>
    %cst_8 = arith.constant 1.000000e-24 : f32
    %19 = vector.broadcast %cst_8 : f32 to vector<1x8xf32>
    %20 = arith.maximumf %7, %19 : vector<1x8xf32>
    %21 = math.rsqrt %20 : vector<1x8xf32>
    %22 = arith.mulf %14, %21 : vector<1x8xf32>
    %cst_9 = arith.constant 1.000000e-24 : f32
    %23 = vector.broadcast %cst_9 : f32 to vector<1x8xf32>
    %24 = arith.maximumf %10, %23 : vector<1x8xf32>
    %25 = math.rsqrt %24 : vector<1x8xf32>
    %26 = arith.mulf %18, %25 : vector<1x8xf32>
    %27 = arith.addf %22, %26 : vector<1x8xf32>
    %c0_10 = arith.constant 0 : index
    %c0_11 = arith.constant 0 : index
    %28 = memref.load %arg4[%c0_10, %c0_11] : memref<1x1xf32, #tpu.memory_space<smem>>
    %29 = vector.broadcast %28 : f32 to vector<1x8xf32>
    %30 = arith.addf %27, %29 : vector<1x8xf32>
    %c0_12 = arith.constant 0 : index
    %c0_13 = arith.constant 0 : index
    %31 = vector.load %arg5[%c0_12, %c0_13] : memref<1x8xf32, #tpu.memory_space<vmem>>, vector<1x8xf32>
    tpu.vector_store %arg5[%c0_12, %c0_13], %30 {strides = array<i32>} : memref<1x8xf32, #tpu.memory_space<vmem>>, vector<1x8xf32>,
    return
  }
  func.func @transform_0(%arg0: i32) -> (i32, i32) {
    %c0_i32 = arith.constant 0 : i32
    %c0_i32_0 = arith.constant 0 : i32
    return %c0_i32, %arg0 : i32, i32
  }
  func.func @transform_1(%arg0: i32) -> (i32, i32) {
    %c0_i32 = arith.constant 0 : i32
    %c0_i32_0 = arith.constant 0 : i32
    return %c0_i32, %arg0 : i32, i32
  }
  func.func @transform_2(%arg0: i32) -> (i32, i32) {
    %c0_i32 = arith.constant 0 : i32
    %c0_i32_0 = arith.constant 0 : i32
    %c0_i32_1 = arith.constant 0 : i32
    return %c0_i32, %c0_i32_0 : i32, i32
  }
  func.func @transform_3(%arg0: i32) -> (i32, i32) {
    %c0_i32 = arith.constant 0 : i32
    %c0_i32_0 = arith.constant 0 : i32
    %c0_i32_1 = arith.constant 0 : i32
    return %c0_i32, %c0_i32_0 : i32, i32
  }
  func.func @transform_4(%arg0: i32) -> (i32, i32) {
    %c0_i32 = arith.constant 0 : i32
    %c0_i32_0 = arith.constant 0 : i32
    return %c0_i32, %arg0 : i32, i32
  }
}

</mosaic_0001>

<bundles_post_ra>
// kernel: tpu_custom_call.1
= control target key start
LH: loop header
LB: loop body
LE: loop exit
PB: predicated region body
PF: predicated region fallthrough
CT: control target
= control target key end

     0   :  { %v194_v1 = vmov 1   ;;  %v195_v2 = vmov 0   ;;  %s280_s0 = inlined_call_operand.vmem [shape: f32[32,8], index: 0, kind: input, shape index: {}]   ;;  %s281_s1 = inlined_call_operand.vmem [shape: f32[32,8], index: 1, kind: input, shape index: {}]   ;;  %s282_s2 = inlined_call_operand.vmem [shape: f32[32,2], index: 2, kind: input, shape index: {}]   ;;  %s283_s3 = inlined_call_operand.<no memory space> [shape: f32[1,1], index: 3, kind: input, shape index: {}]   ;;  %s284_s4 = inlined_call_operand.hbm [shape: f32[1,8], index: 4, kind: output, shape index: {}]  }
   0x1   :  { %v27_v0 = vld [vmem:[%s282_s2] sm:$0xff]  ;;  %166 = vset.pattern.permute.xlu1 %v194_v1  ;;  %165 = vset.pattern.permute.xlu0 %v195_v2  ;;  %v28_v3 = vld [vmem:[%s282_s2 + $0x8] sm:$0xff] }
   0x2   :  { %104 = vperm.xlu1 %166, %v27_v0   ;;  %68 = vperm.xlu0 %165, %v27_v0  }
   0x3   :  { %10 = vsyncpa [#allocation4], 0  ;;  %v29_v4 = vld [vmem:[%s282_s2 + $0x10] sm:$0xff]  ;;  %v30_v5 = vld [vmem:[%s282_s2 + $0x18] sm:$0xff]  ;;  %vm35_vm0 = vcmask 64512   ;;  %s196_s12 = smov [#allocation3]  }
   0x4   :  { %v23_v6 = vld [vmem:[%s281_s1] sm:$0xff]  ;;  %v24_v7 = vld [vmem:[%s281_s1 + $0x8] sm:$0xff]  ;;  %v25_v12 = vld [vmem:[%s281_s1 + $0x10] sm:$0xff]  ;;  %s154_s13 = sshll.u32 %s196_s12, 4  ;;  %vm146_vm1 = vcmask 57344   ;;  %s155_s13 = int_to_ptr.vmem [resolvable:$true] %s154_s13 }
   0x5   :  { %v19_v8 = vld [vmem:[%s280_s0] sm:$0xff]  ;;  %v20_v9 = vld [vmem:[%s280_s0 + $0x8] sm:$0xff]  ;;  %v49_v10 = vmul.f32 %v23_v6, %v23_v6  ;;  %v50_v11 = vmul.f32 %v24_v7, %v24_v7  ;;  %v21_v15 = vld [vmem:[%s280_s0 + $0x10] sm:$0xff]  ;;  %v51_v18 = vmul.f32 %v25_v12, %v25_v12  ;;  %s172_s14 = scalar_lea.vmem %s155_s13, 16  ;;  %s176_s15 = scalar_lea.vmem %s155_s13, 32 }
   0x6   :  { %108 = vperm.xlu1 %166, %v28_v3   ;;  %73 = vperm.xlu0 %165, %v28_v3   ;;  %v31_v13 = vmul.f32 %v19_v8, %v19_v8  ;;  %v32_v14 = vmul.f32 %v20_v9, %v20_v9  ;;  %v26_v19 = vld [vmem:[%s281_s1 + $0x18] sm:$0xff]  ;;  %v33_v22 = vmul.f32 %v21_v15, %v21_v15  ;;  %p173_p0 = scmp.ne.s32.totalorder %s155_s13, %s172_s14  ;;  %p177_p1 = scmp.lt.s32.totalorder %s155_s13, %s155_s13 }
   0x7   :  { %v53_v16 = vsel %vm35_vm0, %v49_v10, 0.0  ;;  %v54_v17 = vsel %vm35_vm0, %v50_v11, 0.0  ;;  %v22_v24 = vld [vmem:[%s280_s0 + $0x18] sm:$0xff]  ;;  %v56_v25 = vsel %vm35_vm0, %v51_v18, 0.0  ;;  %v52_v26 = vmul.f32 %v26_v19, %v26_v19  ;;  %p178_p2 = scmp.lt.s32.totalorder %s176_s15, %s172_s14 }
   0x8   :  { %v36_v20 = vsel %vm35_vm0, %v31_v13, 0.0  ;;  %v37_v21 = vsel %vm35_vm0, %v32_v14, 0.0  ;;  %v55_v23 = vadd.f32 %v54_v17, %v53_v16  ;;  %v39_v28 = vsel %vm35_vm0, %v33_v22, 0.0 }
   0x9   :  { %v38_v27 = vadd.f32 %v37_v21, %v36_v20  ;;  %v34_v29 = vmul.f32 %v22_v24, %v22_v24  ;;  %v58_v31 = vsel %vm35_vm0, %v52_v26, 0.0  ;;  %p179_p3 = por %p178_p2, %p177_p1 }
   0xa   :  { %112 = vperm.xlu1 %166, %v29_v4   ;;  %78 = vperm.xlu0 %165, %v29_v4   ;;  %v57_v30 = vadd.f32 %v56_v25, %v55_v23 }
   0xb   :  { %v40_v32 = vadd.f32 %v39_v28, %v38_v27  ;;  %v41_v33 = vsel %vm35_vm0, %v34_v29, 0.0  ;;  %p180_p4 = pnand %p179_p3, %p173_p0 }
   0xc   :  { %v59_v34 = vadd.f32 %v58_v31, %v57_v30 }
   0xd   :  { %v42_v35 = vadd.f32 %v41_v33, %v40_v32  ;;  %v144_v32 = vstv %s283_s3 }
   0xe   :  { %116 = vperm.xlu1 %166, %v30_v5   ;;  %83 = vperm.xlu0 %165, %v30_v5   ;;  %v60_v36 = vrot.slane %v59_v34, 4 }
   0xf   :  { %v43_v37 = vrot.slane %v42_v35, 4 }
  0x10   :  { %v61_v38 = vadd.f32 %v60_v36, %v59_v34 }
  0x11   :  { %v44_v39 = vadd.f32 %v43_v37, %v42_v35 }
  0x12   :  { %167 = vset.pattern.permute.xlu0 %v194_v1  ;;  %v62_v40 = vrot.slane %v61_v38, 2 }
  0x13   :  { %v45_v41 = vrot.slane %v44_v39, 2 }
  0x14   :  { %v63_v42 = vadd.f32 %v62_v40, %v61_v38 }
  0x15   :  { %v46_v43 = vadd.f32 %v45_v41, %v44_v39 }
  0x16   :  { %v64_v46 = vrot.slane %v63_v42, 1 }
  0x17   :  { %v47_v47 = vrot.slane %v46_v43, 1 }
  0x18   :  { %v65_v50 = vadd.f32 %v64_v46, %v63_v42 }
  0x19   :  { %v48_v53 = vadd.f32 %v47_v47, %v46_v43 }
  0x1a   :  { %v139_v58 = vmax.f32 %v65_v50, 1e-24 }
  0x1b   :  { %v136_v63 = vmax.f32 %v48_v53, 1e-24 }
  0x1c   :  { %168 = vrsqrt.f32 %v139_v58 }
  0x1d   :  { %170 = vrsqrt.f32 %v136_v63 }
  0x7d   :  { %v105_v44 = vpop.permute.xlu1 %104  ;;  %v69_v45 = vpop.permute.xlu0 %68 }
  0x7e   :  { %v119_v54 = vmul.f32 %v105_v44, %v23_v6  ;;  %v86_v55 = vmul.f32 %v69_v45, %v19_v8 }
  0x80   :  { %v123_v0 = vsel %vm35_vm0, %v119_v54, 0.0  ;;  %v90_v1 = vsel %vm35_vm0, %v86_v55, 0.0 }
  0x81   :  { %v109_v48 = vpop.permute.xlu1 %108  ;;  %v74_v49 = vpop.permute.xlu0 %73 }
  0x82   :  { %v120_v51 = vmul.f32 %v109_v48, %v24_v7  ;;  %v87_v52 = vmul.f32 %v74_v49, %v20_v9 }
  0x84   :  { %v124_v59 = vsel %vm35_vm0, %v120_v51, 0.0  ;;  %v91_v60 = vsel %vm35_vm0, %v87_v52, 0.0 }
  0x85   :  { %v113_v56 = vpop.permute.xlu1 %112  ;;  %v79_v57 = vpop.permute.xlu0 %78  ;;  %v125_v4 = vadd.f32 %v124_v59, %v123_v0  ;;  %v92_v5 = vadd.f32 %v91_v60, %v90_v1 }
  0x86   :  { %v121_v61 = vmul.f32 %v113_v56, %v25_v12  ;;  %v88_v62 = vmul.f32 %v79_v57, %v21_v15 }
  0x88   :  { %v126_v2 = vsel %vm35_vm0, %v121_v61, 0.0  ;;  %v93_v3 = vsel %vm35_vm0, %v88_v62, 0.0 }
  0x89   :  { %v117_v6 = vpop.permute.xlu1 %116  ;;  %v84_v7 = vpop.permute.xlu0 %83  ;;  %v127_v10 = vadd.f32 %v126_v2, %v125_v4  ;;  %v94_v11 = vadd.f32 %v93_v3, %v92_v5 }
  0x8a   :  { %v122_v8 = vmul.f32 %v117_v6, %v26_v19  ;;  %v89_v9 = vmul.f32 %v84_v7, %v22_v24  ;;  %v169_v19 = vpop.eup %168 }
  0x8b   :  { %v171_v27 = vpop.eup %170 }
  0x8c   :  { %v128_v12 = vsel %vm35_vm0, %v122_v8, 0.0  ;;  %v95_v13 = vsel %vm35_vm0, %v89_v9, 0.0 }
  0x8d   :  { %v129_v14 = vadd.f32 %v128_v12, %v127_v10  ;;  %v96_v15 = vadd.f32 %v95_v13, %v94_v11 }
  0x8f   :  { %v130_v16 = vrot.slane %v129_v14, 4  ;;  %v97_v17 = vrot.slane %v96_v15, 4 }
  0x91   :  { %v131_v18 = vadd.f32 %v130_v16, %v129_v14  ;;  %v98_v20 = vadd.f32 %v97_v17, %v96_v15 }
  0x93   :  { %v132_v21 = vrot.slane %v131_v18, 2  ;;  %v99_v22 = vrot.slane %v98_v20, 2 }
  0x95   :  { %v133_v23 = vadd.f32 %v132_v21, %v131_v18  ;;  %v100_v25 = vadd.f32 %v99_v22, %v98_v20 }
  0x97   :  { %v134_v26 = vrot.slane %v133_v23, 1  ;;  %v101_v24 = vrot.slane %v100_v25, 1 }
  0x99   :  { %v135_v28 = vadd.f32 %v134_v26, %v133_v23  ;;  %v102_v29 = vadd.f32 %v101_v24, %v100_v25 }
  0x9b   :  { %v138_v30 = vmul.f32 %v171_v27, %v102_v29  ;;  %v141_v31 = vmul.f32 %v169_v19, %v135_v28 }
  0x9d   :  { %v142_v33 = vadd.f32 %v141_v31, %v138_v30 }
  0x9f   :  { %v145_v34 = vadd.f32 %v144_v32, %v142_v33 }
  0xa1   :  { %147 = vst.msk [vmem:[#allocation3] sm:$0x1] %vm146_vm1, %v145_v34 }
  0xa2   :  { %183 = shalt.err (!%p180_p4)
}
  0xa3   :  { %157 = dma.vmem_to_hbm [thread:$0]  %s155_s13, 16, %s284_s4, [#allocation4]  }
  0xa4   :  { %192 = dma.done.wait [#allocation4], 16  }
  0xa5   :  { %193 = vsyncadd [#allocation4], 4294967280 }
  0xa6   :  { %161 = vsyncpa [#allocation4], 1 }

</bundles_post_ra>
